<compile_context>
chip_gen: v7x
topology: tpu7x:2x2x1
jax: 0.10.0
libtpu: 0.0.40
codegen_flags: <defaults>
</compile_context>

<pallas_src>
import functools

import jax
import jax.numpy as jnp
from jax import lax
from jax.experimental import pallas as pl
from jax.experimental.pallas import tpu as pltpu


def _round_up(a: int, b: int) -> int:
    return (a + b - 1) // b * b


def _gemm_bn_silu_kernel(p_ref, w_ref, bn_ref, o_ref, acc_ref):
    """One (TM, TC) output tile; accumulates over the contraction grid axis.

    p_ref:   (TM, TK)  bf16 im2col patch tile
    w_ref:   (TK, TC)  bf16 weight tile
    bn_ref:  (2,  TC)  fp32 folded BN [scale; shift]
    o_ref:   (TM, TC)  output tile
    acc_ref: (TM, TC)  fp32 VMEM scratch accumulator
    """
    @pl.when(pl.program_id(2) == 0)
    def _init():
        acc_ref[...] = jnp.zeros_like(acc_ref)

    # Single MXU matmul per tile: contraction = K*K*Cin (padded to 128-multiple).
    acc_ref[...] += jnp.dot(p_ref[...], w_ref[...],
                            preferred_element_type=jnp.float32)

    @pl.when(pl.program_id(2) == pl.num_programs(2) - 1)
    def _epilogue():
        bn = bn_ref[...]                              # (2, TC) fp32
        y = acc_ref[...] * bn[0:1, :] + bn[1:2, :]    # folded BatchNorm (eval)
        o_ref[...] = (y * jax.nn.sigmoid(y)).astype(o_ref.dtype)  # SiLU


def base_conv(x_nchw, weight_oihw, gamma, beta, running_mean, running_var,
              *, ksize, stride, eps=1e-5, compute_dtype=jnp.bfloat16):
    """Forward of BaseConv (groups=1, bias=False, act='silu'); NCHW in / NCHW out."""
    N, Cin, H, W = x_nchw.shape
    Cout = weight_oihw.shape[0]
    pad = (ksize - 1) // 2
    Ho = (H + 2 * pad - ksize) // stride + 1
    Wo = (W + 2 * pad - ksize) // stride + 1
    Kc = ksize * ksize * Cin

    # ---------------- wrapper glue (layout + im2col patch build) -------------
    x_nhwc = jnp.transpose(x_nchw, (0, 2, 3, 1))
    x_pad = jnp.pad(x_nhwc, ((0, 0), (pad, pad), (pad, pad), (0, 0)))

    taps = []
    for kh in range(ksize):
        for kw in range(ksize):
            taps.append(lax.slice(
                x_pad,
                (0, kh, kw, 0),
                (N, kh + stride * (Ho - 1) + 1, kw + stride * (Wo - 1) + 1, Cin),
                (1, stride, stride, 1)))                  # (N, Ho, Wo, Cin)
    patches = jnp.concatenate(taps, axis=-1)              # (N, Ho, Wo, K*K*Cin)
    patches = patches.reshape(N, Ho * Wo, Kc)

    # Weights OIHW -> (Kh, Kw, Cin, Cout) -> (K*K*Cin, Cout); matches patch order.
    w_mat = jnp.transpose(weight_oihw, (2, 3, 1, 0)).reshape(Kc, Cout)

    # ---------------- tile sizes (lane/MXU friendly) --------------------------
    Kc_p = _round_up(Kc, 128)
    if Kc_p > 512:
        TK = 512
        Kc_p = _round_up(Kc_p, TK)
    else:
        TK = Kc_p

    Cout_p = _round_up(Cout, 128)
    TC = 256 if (Cout_p % 256 == 0) else 128

    M = Ho * Wo
    TM = 256 if M >= 256 else _round_up(M, 8)
    M_p = _round_up(M, TM)

    # Pad to lane-dense, tile-aligned shapes; cast matmul operands to bf16.
    patches = jnp.pad(patches, ((0, 0), (0, M_p - M), (0, Kc_p - Kc)))
    patches = patches.reshape(N * M_p, Kc_p).astype(compute_dtype)
    w_mat = jnp.pad(w_mat, ((0, Kc_p - Kc), (0, Cout_p - Cout))).astype(compute_dtype)

    # Fold BN into a single (2, Cout_p) fp32 scale/shift array.
    scale = (gamma / jnp.sqrt(running_var + eps)).astype(jnp.float32)
    shift = (beta - running_mean * scale).astype(jnp.float32)
    bn = jnp.pad(jnp.stack([scale, shift], axis=0), ((0, 0), (0, Cout_p - Cout)))

    grid = (N * M_p // TM, Cout_p // TC, Kc_p // TK)

    out_dtype = x_nchw.dtype
    cost = pl.CostEstimate(
        flops=2 * N * Ho * Wo * Kc * Cout,
        transcendentals=N * Ho * Wo * Cout,
        bytes_accessed=(N * M_p * Kc_p * 2 + Kc_p * Cout_p * 2
                        + N * M_p * Cout_p * jnp.dtype(out_dtype).itemsize
                        + 2 * Cout_p * 4),
    )

    out = pl.pallas_call(
        _gemm_bn_silu_kernel,
        out_shape=jax.ShapeDtypeStruct((N * M_p, Cout_p), out_dtype),
        grid_spec=pltpu.PrefetchScalarGridSpec(
            num_scalar_prefetch=0,
            grid=grid,
            in_specs=[
                pl.BlockSpec((TM, TK), lambda m, c, k: (m, k)),
                pl.BlockSpec((TK, TC), lambda m, c, k: (k, c)),
                pl.BlockSpec((2, TC), lambda m, c, k: (0, c)),
            ],
            out_specs=pl.BlockSpec((TM, TC), lambda m, c, k: (m, c)),
            scratch_shapes=[pltpu.VMEM((TM, TC), jnp.float32)],
        ),
        compiler_params=pltpu.CompilerParams(
            dimension_semantics=("parallel", "parallel", "arbitrary"),
            vmem_limit_bytes=32 * 1024 * 1024,
        ),
        cost_estimate=cost,
    )(patches, w_mat, bn)

    out = out.reshape(N, M_p, Cout_p)[:, :M, :Cout].reshape(N, Ho, Wo, Cout)
    return jnp.transpose(out, (0, 3, 1, 2))  # back to NCHW


def _reference(x_nchw, weight_oihw, gamma, beta, running_mean, running_var,
               *, ksize, stride, eps=1e-5, compute_dtype=jnp.bfloat16):
    """Pure-JAX reference with the same bf16 input quantization as the kernel."""
    pad = (ksize - 1) // 2
    xq = x_nchw.astype(compute_dtype).astype(jnp.float32)
    wq = weight_oihw.astype(compute_dtype).astype(jnp.float32)
    y = lax.conv_general_dilated(
        xq, wq,
        window_strides=(stride, stride),
        padding=((pad, pad), (pad, pad)),
        dimension_numbers=("NCHW", "OIHW", "NCHW"),
        precision=lax.Precision.HIGHEST,
    )
    scale = gamma / jnp.sqrt(running_var + eps)
    shift = beta - running_mean * scale
    y = y * scale[None, :, None, None] + shift[None, :, None, None]
    return y * jax.nn.sigmoid(y)


if __name__ == "__main__":
    key = jax.random.PRNGKey(0)
    k_x, k_w, k_g, k_b, k_m, k_v = jax.random.split(key, 6)

    N, Cin, H, W = 2, 4, 16, 16
    Cout, ksize, stride = 8, 3, 1

    x = jax.random.normal(k_x, (N, Cin, H, W), dtype=jnp.float32)
    weight = jax.random.normal(k_w, (Cout, Cin, ksize, ksize), dtype=jnp.float32) * 0.1
    gamma = jax.random.uniform(k_g, (Cout,), minval=0.5, maxval=1.5, dtype=jnp.float32)
    beta = jax.random.normal(k_b, (Cout,), dtype=jnp.float32) * 0.1
    running_mean = jax.random.normal(k_m, (Cout,), dtype=jnp.float32) * 0.1
    running_var = jax.random.uniform(k_v, (Cout,), minval=0.5, maxval=1.5, dtype=jnp.float32)

    fwd = jax.jit(functools.partial(base_conv, ksize=ksize, stride=stride))
    out = fwd(x, weight, gamma, beta, running_mean, running_var)
    out = jax.block_until_ready(out)

    ref = _reference(x, weight, gamma, beta, running_mean, running_var,
                     ksize=ksize, stride=stride)
    assert out.shape == (N, Cout, H, W), out.shape
    assert jnp.allclose(out, ref, atol=1e-4, rtol=1e-4), \
        float(jnp.max(jnp.abs(out - ref)))

    print("KERNEL_OK")
</pallas_src>

<mosaic_0001>
module attributes {stable_mosaic.version = 11 : i64} {
  func.func @_gemm_bn_silu_kernel(%arg0: i32, %arg1: i32, %arg2: i32, %arg3: memref<256x128xbf16, #tpu.memory_space<vmem>>, %arg4: memref<128x128xbf16, #tpu.memory_space<vmem>>, %arg5: memref<2x128xf32, #tpu.memory_space<vmem>>, %arg6: memref<256x128xf32, #tpu.memory_space<vmem>>, %arg7: memref<256x128xf32, #tpu.memory_space<vmem>>) attributes {dimension_semantics = [#tpu.dimension_semantics<parallel>, #tpu.dimension_semantics<parallel>, #tpu.dimension_semantics<arbitrary>], iteration_bounds = array<i64: 2, 1, 1>, scalar_prefetch = 0 : i64, scratch_operands = 1 : i64, tpu.core_type = #tpu.core_type<tc>, window_params = [{transform_indices = @transform_0, window_bounds = array<i64: 256, 128>}, {transform_indices = @transform_1, window_bounds = array<i64: 128, 128>}, {transform_indices = @transform_2, window_bounds = array<i64: 2, 128>}, {transform_indices = @transform_3, window_bounds = array<i64: 256, 128>}]} {
    %c0_i32 = arith.constant 0 : i32
    %0 = arith.cmpi eq, %arg2, %c0_i32 : i32
    %1 = arith.extui %0 : i1 to i32
    %c0_i32_0 = arith.constant 0 : i32
    %2 = arith.cmpi ne, %1, %c0_i32_0 : i32
    scf.if %2 {
      %cst_10 = arith.constant 0.000000e+00 : f32
      %12 = vector.broadcast %cst_10 : f32 to vector<256x128xf32>
      %c0_11 = arith.constant 0 : index
      %c0_12 = arith.constant 0 : index
      %13 = vector.load %arg7[%c0_11, %c0_12] : memref<256x128xf32, #tpu.memory_space<vmem>>, vector<256x128xf32>
      tpu.vector_store %arg7[%c0_11, %c0_12], %12 {strides = array<i32>} : memref<256x128xf32, #tpu.memory_space<vmem>>, vector<256x128xf32>,
    } else {
    }
    %c0 = arith.constant 0 : index
    %c0_1 = arith.constant 0 : index
    %3 = vector.load %arg7[%c0, %c0_1] : memref<256x128xf32, #tpu.memory_space<vmem>>, vector<256x128xf32>
    %c0_2 = arith.constant 0 : index
    %c0_3 = arith.constant 0 : index
    %4 = vector.load %arg3[%c0_2, %c0_3] : memref<256x128xbf16, #tpu.memory_space<vmem>>, vector<256x128xbf16>
    %c0_4 = arith.constant 0 : index
    %c0_5 = arith.constant 0 : index
    %5 = vector.load %arg4[%c0_4, %c0_5] : memref<128x128xbf16, #tpu.memory_space<vmem>>, vector<128x128xbf16>
    %cst = arith.constant dense<0.000000e+00> : vector<256x128xf32>
    %6 = tpu.matmul %4, %5, %cst {dimension_numbers = #tpu.dot_dimension_numbers<[1], [0], [0], [1], [0, 0, 1, 1], [], []>} : vector<256x128xbf16>, vector<128x128xbf16>, vector<256x128xf32> -> vector<256x128xf32>
    %7 = arith.addf %3, %6 : vector<256x128xf32>
    %c0_6 = arith.constant 0 : index
    %c0_7 = arith.constant 0 : index
    %8 = vector.load %arg7[%c0_6, %c0_7] : memref<256x128xf32, #tpu.memory_space<vmem>>, vector<256x128xf32>
    tpu.vector_store %arg7[%c0_6, %c0_7], %7 {strides = array<i32>} : memref<256x128xf32, #tpu.memory_space<vmem>>, vector<256x128xf32>,
    %c0_i32_8 = arith.constant 0 : i32
    %9 = arith.cmpi eq, %arg2, %c0_i32_8 : i32
    %10 = arith.extui %9 : i1 to i32
    %c0_i32_9 = arith.constant 0 : i32
    %11 = arith.cmpi ne, %10, %c0_i32_9 : i32
    scf.if %11 {
      %c0_10 = arith.constant 0 : index
      %c0_11 = arith.constant 0 : index
      %12 = vector.load %arg5[%c0_10, %c0_11] : memref<2x128xf32, #tpu.memory_space<vmem>>, vector<2x128xf32>
      %c0_12 = arith.constant 0 : index
      %c0_13 = arith.constant 0 : index
      %13 = vector.load %arg7[%c0_12, %c0_13] : memref<256x128xf32, #tpu.memory_space<vmem>>, vector<256x128xf32>
      %14 = vector.extract_strided_slice %12 {offsets = [0, 0], sizes = [1, 128], strides = [1, 1]} : vector<2x128xf32> to vector<1x128xf32>
      %15 = vector.broadcast %14 : vector<1x128xf32> to vector<256x128xf32>
      %16 = arith.mulf %13, %15 : vector<256x128xf32>
      %17 = vector.extract_strided_slice %12 {offsets = [1, 0], sizes = [1, 128], strides = [1, 1]} : vector<2x128xf32> to vector<1x128xf32>
      %18 = vector.broadcast %17 : vector<1x128xf32> to vector<256x128xf32>
      %19 = arith.addf %16, %18 : vector<256x128xf32>
      %20 = arith.negf %19 : vector<256x128xf32>
      %21 = math.exp %20 : vector<256x128xf32>
      %cst_14 = arith.constant 1.000000e+00 : f32
      %22 = vector.broadcast %cst_14 : f32 to vector<256x128xf32>
      %23 = arith.addf %22, %21 : vector<256x128xf32>
      %24 = arith.divf %22, %23 : vector<256x128xf32>
      %25 = arith.mulf %19, %24 : vector<256x128xf32>
      %c0_15 = arith.constant 0 : index
      %c0_16 = arith.constant 0 : index
      %26 = vector.load %arg6[%c0_15, %c0_16] : memref<256x128xf32, #tpu.memory_space<vmem>>, vector<256x128xf32>
      tpu.vector_store %arg6[%c0_15, %c0_16], %25 {strides = array<i32>} : memref<256x128xf32, #tpu.memory_space<vmem>>, vector<256x128xf32>,
    } else {
    }
    return
  }
  func.func @transform_0(%arg0: i32, %arg1: i32, %arg2: i32) -> (i32, i32) {
    %c0_i32 = arith.constant 0 : i32
    return %arg0, %arg2 : i32, i32
  }
  func.func @transform_1(%arg0: i32, %arg1: i32, %arg2: i32) -> (i32, i32) {
    %c0_i32 = arith.constant 0 : i32
    return %arg2, %arg1 : i32, i32
  }
  func.func @transform_2(%arg0: i32, %arg1: i32, %arg2: i32) -> (i32, i32) {
    %c0_i32 = arith.constant 0 : i32
    %c0_i32_0 = arith.constant 0 : i32
    return %c0_i32, %arg1 : i32, i32
  }
  func.func @transform_3(%arg0: i32, %arg1: i32, %arg2: i32) -> (i32, i32) {
    %c0_i32 = arith.constant 0 : i32
    return %arg0, %arg1 : i32, i32
  }
}

</mosaic_0001>

<bundles_post_ra>
// kernel: base_conv.1
= control target key start
LH: loop header
LB: loop body
LE: loop exit
PB: predicated region body
PF: predicated region fallthrough
CT: control target
= control target key end

     0   :  { %s1603_s12 = smov 0   ;;  %s1605_s13 = smov 0   ;;  %s1936_s0 = inlined_call_operand.vmem [shape: bf16[512,128], index: 0, kind: input, shape index: {}]   ;;  %s1937_s1 = inlined_call_operand.vmem [shape: bf16[128,128], index: 1, kind: input, shape index: {}]   ;;  %s1938_s2 = inlined_call_operand.vmem [shape: f32[2,128], index: 2, kind: input, shape index: {}]   ;;  %s1939_s3 = inlined_call_operand.vmem [shape: f32[512,128], index: 3, kind: output, shape index: {}]  }
   0x1   :  { %s1607_s14 = smov 0  }
   0x2 LB: > { %s32_s15 = sadd.s32 1, %s1577_s13  ;;  %p1232_p0 = scmp.ge.s32.totalorder %s1581_s14, 1  ;;  %s1581_s14 = sphi %s1607_s14, %s13_s14   ;;  %s1577_s13 = sphi %s1605_s13, %s1941_s13   ;;  %s1573_s12 = sphi %s1603_s12, %s1940_s12  }
   0x3   : > { %p34_p1 = scmp.ge.s32.totalorder %s32_s15, 2  ;;  %p189_p2 = scmp.lt.s32.totalorder %s1581_s14, 3 }
   0x5   : > { %s1943_s15 = smov (%p34_p1, %s32_s15), 0  ;;  %p190_p3 = pnand %p1232_p0, %p189_p2 }
   0x6   : > { %v1407_v0 = vld [vmem:[%s1937_s1] sm:$0xff] (!%p190_p3)   ;;  %s1233_s18 = sshll.u32 (!%p190_p3), %s1573_s12, 5  ;;  %v1408_v1 = vld [vmem:[%s1937_s1 + $0x8] sm:$0xff] (!%p190_p3)   ;;  %v1409_v2 = vld [vmem:[%s1937_s1 + $0x10] sm:$0xff] (!%p190_p3)   ;;  %v784_v24 = vlaneseq (!%p190_p3) }
   0x7   : > { %193 = sbr.rel (%p190_p3) target bundleno = 343 (0x157), region = 32  ;;  %p232_p4 = scmp.lt.s32.totalorder (!%p190_p3), %s1233_s18, 63  ;;  %1319 = vmatprep.subr.bf16.mxu0 (!%p190_p3), %v1407_v0  ;;  %1367 = vmatprep.subr.bf16.mxu1 (!%p190_p3), %v1407_v0  ;;  %v1410_v3 = vld [vmem:[%s1937_s1 + $0x18] sm:$0xff] (!%p190_p3)   ;;  %v1411_v6 = vld [vmem:[%s1937_s1 + $0x20] sm:$0xff] (!%p190_p3)   ;;  %v1412_v7 = vld [vmem:[%s1937_s1 + $0x28] sm:$0xff] (!%p190_p3)  }
   0x8   : > { %1320 = vmatpush3.bf16.msra.mxu0 (!%p190_p3), %v1407_v0  ;;  %1375 = vmatpush3.bf16.msra.mxu1 (!%p190_p3), %v1407_v0  ;;  %v1413_v8 = vld [vmem:[%s1937_s1 + $0x30] sm:$0xff] (!%p190_p3)   ;;  %v1414_v9 = vld [vmem:[%s1937_s1 + $0x38] sm:$0xff] (!%p190_p3)   ;;  %v785_v25 = vshrl.u32 (!%p190_p3), %v784_v24, 7  ;;  %v751_v27 = vld [vmem:[%s1938_s2] sm:$0x3] (!%p190_p3) }
   0x9   : > { %1321 = vmatprep.subr.bf16.mxu0 (!%p190_p3), %v1408_v1  ;;  %1368 = vmatprep.subr.bf16.mxu1 (!%p190_p3), %v1408_v1 }
   0xa   : > { %v786_v26 = vsub.s32 (!%p190_p3), 0, %v785_v25  ;;  %v822_v28 = vsub.s32 (!%p190_p3), 1, %v785_v25 }
   0xc   : > { %1322 = vmatpush3.bf16.msra.mxu0 (!%p190_p3), %v1408_v1  ;;  %1376 = vmatpush3.bf16.msra.mxu1 (!%p190_p3), %v1408_v1  ;;  %v1672_v29 = vrot.slane (!%p190_p3), %v751_v27, %v786_v26  ;;  %v1674_v30 = vrot.slane (!%p190_p3), %v751_v27, %v822_v28 }
   0xd   : > { %1323 = vmatprep.subr.bf16.mxu0 (!%p190_p3), %v1409_v2  ;;  %1369 = vmatprep.subr.bf16.mxu1 (!%p190_p3), %v1409_v2 }
   0xe   : > { %s1945_s18 = smov (!%p232_p4, %s1233_s18), 63 }
   0xf   : > { %s1234_s23 = sshll.u32 %s1945_s18, 2  ;;  %s1236_s12 = sshll.u32 %s1945_s18, 3 }
  0x10   : > { %s1636_s26 = scalar_lea.vmem %s1936_s0, %s1234_s23  ;;  %1324 = vmatpush3.bf16.msra.mxu0 %v1409_v2  ;;  %1377 = vmatpush3.bf16.msra.mxu1 %v1409_v2  ;;  %s1790_s18 = scalar_lea.vmem %s1939_s3, %s1236_s12 }
  0x11   : > { %v1415_v4 = vld [vmem:[%s1636_s26] sm:$0xff]   ;;  %1325 = vmatprep.subr.bf16.mxu0 %v1410_v3  ;;  %1370 = vmatprep.subr.bf16.mxu1 %v1410_v3  ;;  %v1417_v10 = vld [vmem:[%s1636_s26 + $0x8] sm:$0xff]   ;;  %v1419_v12 = vld [vmem:[%s1636_s26 + $0x10] sm:$0xff]  }
  0x12   : > { %v1416_v5 = vld [vmem:[%s1636_s26 + $0x40] sm:$0xff]   ;;  %1335 = vmatprep.mubr.bf16.mxu0 %v1415_v4  ;;  %v1418_v11 = vld [vmem:[%s1636_s26 + $0x48] sm:$0xff]   ;;  %v1420_v13 = vld [vmem:[%s1636_s26 + $0x50] sm:$0xff]  }
  0x13   : > { %1351 = vmatprep.mubr.bf16.mxu1 %v1416_v5  ;;  %v1421_v14 = vld [vmem:[%s1636_s26 + $0x18] sm:$0xff]   ;;  %v1423_v16 = vld [vmem:[%s1636_s26 + $0x20] sm:$0xff]   ;;  %v1425_v18 = vld [vmem:[%s1636_s26 + $0x28] sm:$0xff]  }
  0x14   : > { %1326 = vmatpush3.bf16.msra.mxu0 %v1410_v3  ;;  %1378 = vmatpush3.bf16.msra.mxu1 %v1410_v3  ;;  %v1422_v15 = vld [vmem:[%s1636_s26 + $0x58] sm:$0xff]   ;;  %v1424_v17 = vld [vmem:[%s1636_s26 + $0x60] sm:$0xff]   ;;  %v1426_v19 = vld [vmem:[%s1636_s26 + $0x68] sm:$0xff]  }
  0x15   : > { %1327 = vmatprep.subr.bf16.mxu0 %v1411_v6  ;;  %1371 = vmatprep.subr.bf16.mxu1 %v1411_v6  ;;  %v1427_v20 = vld [vmem:[%s1636_s26 + $0x30] sm:$0xff]   ;;  %v1429_v22 = vld [vmem:[%s1636_s26 + $0x38] sm:$0xff]  }
  0x16   : > { %v1428_v21 = vld [vmem:[%s1636_s26 + $0x70] sm:$0xff]   ;;  %v1430_v23 = vld [vmem:[%s1636_s26 + $0x78] sm:$0xff]  }
  0x18   : > { %1328 = vmatpush3.bf16.msra.mxu0 %v1411_v6  ;;  %1379 = vmatpush3.bf16.msra.mxu1 %v1411_v6 }
  0x19   : > { %1329 = vmatprep.subr.bf16.mxu0 %v1412_v7  ;;  %1372 = vmatprep.subr.bf16.mxu1 %v1412_v7 }
  0x1c   : > { %1330 = vmatpush3.bf16.msra.mxu0 %v1412_v7  ;;  %1380 = vmatpush3.bf16.msra.mxu1 %v1412_v7 }
  0x1d   : > { %1331 = vmatprep.subr.bf16.mxu0 %v1413_v8  ;;  %1373 = vmatprep.subr.bf16.mxu1 %v1413_v8 }
  0x20   : > { %1332 = vmatpush3.bf16.msra.mxu0 %v1413_v8  ;;  %1381 = vmatpush3.bf16.msra.mxu1 %v1413_v8 }
  0x21   : > { %1333 = vmatprep.subr.bf16.mxu0 %v1414_v9  ;;  %1374 = vmatprep.subr.bf16.mxu1 %v1414_v9 }
  0x24   : > { %1334 = vmatpush3.bf16.msra.mxu0 %v1414_v9  ;;  %1382 = vmatpush3.bf16.msra.mxu1 %v1414_v9 }
  0x27   : > { %1336 = vmatmul.mubr.bf16.vlgmr.msra.gmra.mrb[0].mxu0 %v1417_v10  ;;  %1352 = vmatmul.mubr.bf16.vlgmr.msra.gmra.mrb[0].mxu1 %v1418_v11 }
  0x28   : > { %1339 = vmatprep.mubr.bf16.mxu0 %v1419_v12  ;;  %1355 = vmatprep.mubr.bf16.mxu1 %v1420_v13 }
  0x2f   : > { %1340 = vmatmul.mubr.bf16.gmra.mrb[4].mxu0 %v1421_v14  ;;  %1356 = vmatmul.mubr.bf16.gmra.mrb[4].mxu1 %v1422_v15 }
  0x30   : > { %1343 = vmatprep.mubr.bf16.mxu0 %v1423_v16  ;;  %1359 = vmatprep.mubr.bf16.mxu1 %v1424_v17 }
  0x37   : > { %1344 = vmatmul.mubr.bf16.gmra.mrb[8].mxu0 %v1425_v18  ;;  %1360 = vmatmul.mubr.bf16.gmra.mrb[8].mxu1 %v1426_v19 }
  0x38   : > { %1347 = vmatprep.mubr.bf16.mxu0 %v1427_v20  ;;  %1363 = vmatprep.mubr.bf16.mxu1 %v1428_v21 }
  0x3f   : > { %1348 = vmatmul.mubr.bf16.gmra.mrb[12].mxu0 %v1429_v22  ;;  %1364 = vmatmul.mubr.bf16.gmra.mrb[12].mxu1 %v1430_v23 }
  0xfa   : > { %v1337_v31 = vpop.f32.mrb[0].mxu0  ;;  %v1353_v32 = vpop.f32.mrb[0].mxu1 }
  0xfb   : > { %v790_v33 = vmul.f32 %v1337_v31, %v1672_v29  ;;  %v806_v34 = vmul.f32 %v1353_v32, %v1672_v29  ;;  %v557_v35 = vpop.f32.mrb[1].mxu0  ;;  %v621_v36 = vpop.f32.mrb[1].mxu1 }
  0xfc   : > { %v788_v37 = vmul.f32 %v1672_v29, %v557_v35  ;;  %v804_v38 = vmul.f32 %v1672_v29, %v621_v36  ;;  %v1338_v39 = vpop.f32.mrb[2].mxu0  ;;  %v1354_v40 = vpop.f32.mrb[2].mxu1 }
  0xfd   : > { %v1681_v41 = vadd.f32 %v1674_v30, %v790_v33  ;;  %v1684_v42 = vadd.f32 %v1674_v30, %v806_v34  ;;  %v791_v43 = vmul.f32 %v1338_v39, %v1672_v29  ;;  %v807_v44 = vmul.f32 %v1354_v40, %v1672_v29  ;;  %v560_v45 = vpop.f32.mrb[3].mxu0  ;;  %v624_v46 = vpop.f32.mrb[3].mxu1 }
  0xfe   : > { %v1689_v47 = vadd.f32 %v1674_v30, %v788_v37  ;;  %v1692_v48 = vadd.f32 %v1674_v30, %v804_v38  ;;  %v789_v49 = vmul.f32 %v1672_v29, %v560_v45  ;;  %v805_v50 = vmul.f32 %v1672_v29, %v624_v46 }
  0xff   : > { %v1263_v51 = vmul.f32 -1.442695, %v1681_v41  ;;  %v1279_v52 = vmul.f32 -1.442695, %v1684_v42  ;;  %v1699_v53 = vadd.f32 %v1674_v30, %v791_v43  ;;  %v1702_v54 = vadd.f32 %v1674_v30, %v807_v44 }
 0x100   : > { %v1261_v55 = vmul.f32 -1.442695, %v1689_v47  ;;  %v1277_v56 = vmul.f32 -1.442695, %v1692_v48  ;;  %v1707_v57 = vadd.f32 %v1674_v30, %v789_v49  ;;  %v1710_v58 = vadd.f32 %v1674_v30, %v805_v50 }
 0x101   : > { %1431 = vpow2.f32 %v1263_v51  ;;  %v1264_v59 = vmul.f32 -1.442695, %v1699_v53  ;;  %v1280_v60 = vmul.f32 -1.442695, %v1702_v54 }
 0x102   : > { %1433 = vpow2.f32 %v1279_v52  ;;  %v1341_v61 = vpop.f32.mrb[4].mxu0  ;;  %v1357_v62 = vpop.f32.mrb[4].mxu1  ;;  %v1262_v63 = vmul.f32 -1.442695, %v1707_v57  ;;  %v1278_v4 = vmul.f32 -1.442695, %v1710_v58 }
 0x103   : > { %1435 = vpow2.f32 %v1261_v55  ;;  %v794_v0 = vmul.f32 %v1341_v61, %v1672_v29  ;;  %v810_v1 = vmul.f32 %v1357_v62, %v1672_v29  ;;  %v573_v2 = vpop.f32.mrb[5].mxu0  ;;  %v637_v3 = vpop.f32.mrb[5].mxu1 }
 0x104   : > { %1437 = vpow2.f32 %v1277_v56  ;;  %v792_v5 = vmul.f32 %v1672_v29, %v573_v2  ;;  %v808_v6 = vmul.f32 %v1672_v29, %v637_v3  ;;  %v1342_v7 = vpop.f32.mrb[6].mxu0  ;;  %v1358_v8 = vpop.f32.mrb[6].mxu1 }
 0x105   : > { %1439 = vpow2.f32 %v1264_v59  ;;  %v1721_v9 = vadd.f32 %v1674_v30, %v794_v0  ;;  %v1724_v10 = vadd.f32 %v1674_v30, %v810_v1  ;;  %v795_v11 = vmul.f32 %v1342_v7, %v1672_v29  ;;  %v576_v12 = vpop.f32.mrb[7].mxu0  ;;  %v640_v13 = vpop.f32.mrb[7].mxu1 }
 0x106   : > { %1441 = vpow2.f32 %v1280_v60  ;;  %v1728_v14 = vadd.f32 %v1674_v30, %v792_v5  ;;  %v1731_v15 = vadd.f32 %v1674_v30, %v808_v6  ;;  %v811_v25 = vmul.f32 %v1358_v8, %v1672_v29 }
 0x107   : > { %1443 = vpow2.f32 %v1262_v63  ;;  %v1267_v16 = vmul.f32 -1.442695, %v1721_v9  ;;  %v1283_v17 = vmul.f32 -1.442695, %v1724_v10  ;;  %v1736_v18 = vadd.f32 %v1674_v30, %v795_v11 }
 0x108   : > { %1445 = vpow2.f32 %v1278_v4  ;;  %v1265_v19 = vmul.f32 -1.442695, %v1728_v14  ;;  %v1281_v20 = vmul.f32 -1.442695, %v1731_v15  ;;  %v793_v32 = vmul.f32 %v1672_v29, %v576_v12 }
 0x109   : > { %1447 = vpow2.f32 %v1267_v16  ;;  %v1268_v21 = vmul.f32 -1.442695, %v1736_v18  ;;  %v809_v37 = vmul.f32 %v1672_v29, %v640_v13  ;;  %v1747_v46 = vadd.f32 %v1674_v30, %v811_v25 }
 0x10a   : > { %1449 = vpow2.f32 %v1283_v17  ;;  %v1345_v22 = vpop.f32.mrb[8].mxu0  ;;  %v1361_v23 = vpop.f32.mrb[8].mxu1  ;;  %v1751_v52 = vadd.f32 %v1674_v30, %v793_v32 }
 0x10b   : > { %v1432_v24 = vpop.eup %1431  ;;  %1451 = vpow2.f32 %v1265_v19  ;;  %v589_v26 = vpop.f32.mrb[9].mxu0  ;;  %v798_v49 = vmul.f32 %v1345_v22, %v1672_v29  ;;  %v814_v55 = vmul.f32 %v1361_v23, %v1672_v29  ;;  %v1755_v60 = vadd.f32 %v1674_v30, %v809_v37 }
 0x10c   : > { %v653_v27 = vpop.f32.mrb[9].mxu1  ;;  %v1434_v28 = vpop.eup %1433  ;;  %v954_v31 = vadd.f32 1.0, %v1432_v24  ;;  %1453 = vpow2.f32 %v1281_v20  ;;  %v796_v63 = vmul.f32 %v1672_v29, %v589_v26  ;;  %v1284_v4 = vmul.f32 -1.442695, %v1747_v46 }
 0x10d   : > { %v1346_v33 = vpop.f32.mrb[10].mxu0  ;;  %v1362_v34 = vpop.f32.mrb[10].mxu1  ;;  %v970_v36 = vadd.f32 1.0, %v1434_v28  ;;  %1455 = vpow2.f32 %v1268_v21  ;;  %v1760_v5 = vadd.f32 %v1674_v30, %v798_v49  ;;  %v1266_v12 = vmul.f32 -1.442695, %v1751_v52 }
 0x10e   : > { %v1436_v35 = vpop.eup %1435  ;;  %v592_v38 = vpop.f32.mrb[11].mxu0  ;;  %1457 = vrcp.f32 %v954_v31  ;;  %v1768_v13 = vadd.f32 %v1674_v30, %v814_v55  ;;  %v1282_v21 = vmul.f32 -1.442695, %v1755_v60  ;;  %v812_v22 = vmul.f32 %v1672_v29, %v653_v27 }
 0x10f   : > { %v1438_v39 = vpop.eup %1437  ;;  %v952_v40 = vadd.f32 1.0, %v1436_v35  ;;  %v1744_v43 = vpop.f32.mrb[11].mxu1  ;;  %1459 = vrcp.f32 %v970_v36  ;;  %v1782_v28 = vadd.f32 %v1674_v30, %v796_v63  ;;  %v799_v31 = vmul.f32 %v1346_v33, %v1672_v29 }
 0x110   : > { %v1440_v44 = vpop.eup %1439  ;;  %v968_v45 = vadd.f32 1.0, %v1438_v39  ;;  %v1271_v36 = vmul.f32 -1.442695, %v1760_v5  ;;  %v815_v37 = vmul.f32 %v1362_v34, %v1672_v29  ;;  %v797_v33 = vmul.f32 %v1672_v29, %v592_v38 }
 0x111   : > { %v1442_v50 = vpop.eup %1441  ;;  %1461 = vrcp.f32 %v952_v40  ;;  %v955_v51 = vadd.f32 1.0, %v1440_v44  ;;  %v1287_v40 = vmul.f32 -1.442695, %v1768_v13  ;;  %v1796_v34 = vadd.f32 %v1674_v30, %v812_v22 }
 0x112   : > { %v1444_v56 = vpop.eup %1443  ;;  %1463 = vrcp.f32 %v968_v45  ;;  %v971_v59 = vadd.f32 1.0, %v1442_v50  ;;  %v1349_v0 = vpop.f32.mrb[12].mxu0  ;;  %v813_v49 = vmul.f32 %v1672_v29, %v1744_v43  ;;  %v1802_v55 = vadd.f32 %v1674_v30, %v799_v31 }
 0x113   : > { %v1446_v61 = vpop.eup %1445  ;;  %1465 = vrcp.f32 %v955_v51  ;;  %v953_v62 = vadd.f32 1.0, %v1444_v56  ;;  %v1365_v1 = vpop.f32.mrb[12].mxu1  ;;  %v802_v38 = vmul.f32 %v1349_v0, %v1672_v29  ;;  %v1815_v63 = vadd.f32 %v1674_v30, %v797_v33 }
 0x114   : > { %v1448_v2 = vpop.eup %1447  ;;  %1467 = vrcp.f32 %v971_v59  ;;  %v969_v3 = vadd.f32 1.0, %v1446_v61  ;;  %v1762_v6 = vpop.f32.mrb[13].mxu0  ;;  %v1808_v59 = vadd.f32 %v1674_v30, %v815_v37  ;;  %v818_v43 = vmul.f32 %v1365_v1, %v1672_v29 }
 0x115   : > { %v1764_v7 = vpop.f32.mrb[13].mxu1  ;;  %v1450_v8 = vpop.eup %1449  ;;  %1469 = vrcp.f32 %v953_v62  ;;  %v958_v11 = vadd.f32 1.0, %v1448_v2  ;;  %v1269_v62 = vmul.f32 -1.442695, %v1782_v28  ;;  %v1285_v2 = vmul.f32 -1.442695, %v1796_v34 }
 0x116   : > { %v1770_v16 = vpop.f32.mrb[14].mxu0  ;;  %v1772_v17 = vpop.f32.mrb[14].mxu1  ;;  %1471 = vrcp.f32 %v969_v3  ;;  %v974_v20 = vadd.f32 1.0, %v1450_v8  ;;  %v1821_v1 = vadd.f32 %v1674_v30, %v813_v49  ;;  %v1827_v8 = vadd.f32 %v1674_v30, %v802_v38 }
 0x117   : > { %v1452_v19 = vpop.eup %1451  ;;  %v1777_v23 = vpop.f32.mrb[15].mxu0  ;;  %1473 = vrcp.f32 %v958_v11  ;;  %v816_v38 = vmul.f32 %v1672_v29, %v1764_v7 }
 0x118   : > { %v1779_v24 = vpop.f32.mrb[15].mxu1  ;;  %v1454_v25 = vpop.eup %1453  ;;  %v956_v26 = vadd.f32 1.0, %v1452_v19  ;;  %1475 = vrcp.f32 %v974_v20  ;;  %v1833_v19 = vadd.f32 %v1674_v30, %v818_v43  ;;  %v803_v43 = vmul.f32 %v1770_v16, %v1672_v29 }
 0x119   : > { %v1456_v32 = vpop.eup %1455  ;;  %v972_v35 = vadd.f32 1.0, %v1454_v25  ;;  %v801_v7 = vmul.f32 %v1672_v29, %v1777_v23  ;;  %v1867_v16 = vadd.f32 %v1674_v30, %v816_v38 }
 0x11a   : > { %v1458_v27 = vpop.eup %1457  ;;  %1477 = vrcp.f32 %v956_v26  ;;  %v959_v39 = vadd.f32 1.0, %v1456_v32 }
 0x11b   : > { %v1460_v44 = vpop.eup %1459  ;;  %v1050_v45 = vmul.f32 %v1458_v27, %v1681_v41  ;;  %1479 = vrcp.f32 %v972_v35 }
 0x11c   : > { %v1462_v50 = vpop.eup %1461  ;;  %v1066_v51 = vmul.f32 %v1460_v44, %v1684_v42  ;;  %1481 = vrcp.f32 %v959_v39 }
 0x11d   : > { %v1464_v56 = vpop.eup %1463  ;;  %1082 = vst [vmem:[%s1790_s18 + $0x10] sm:$0xff] %v1050_v45  ;;  %v1048_v41 = vmul.f32 %v1462_v50, %v1689_v47  ;;  %1483 = vpow2.f32 %v1284_v4  ;;  %v1272_v4 = vmul.f32 -1.442695, %v1802_v55  ;;  %v800_v50 = vmul.f32 %v1672_v29, %v1762_v6 }
 0x11e   : > { %v1466_v61 = vpop.eup %1465  ;;  %1098 = vst [vmem:[%s1790_s18 + $0x90] sm:$0xff] %v1066_v51  ;;  %v1064_v42 = vmul.f32 %v1464_v56, %v1692_v48  ;;  %1485 = vpow2.f32 %v1266_v12  ;;  %v1288_v12 = vmul.f32 -1.442695, %v1808_v59 }
 0x11f   : > { %v1468_v0 = vpop.eup %1467  ;;  %1080 = vst [vmem:[%s1790_s18] sm:$0xff] %v1048_v41  ;;  %v1051_v47 = vmul.f32 %v1466_v61, %v1699_v53  ;;  %1487 = vpow2.f32 %v1282_v21  ;;  %v1270_v21 = vmul.f32 -1.442695, %v1815_v63 }
 0x120   : > { %v1470_v3 = vpop.eup %1469  ;;  %1096 = vst [vmem:[%s1790_s18 + $0x80] sm:$0xff] %v1064_v42  ;;  %v1067_v48 = vmul.f32 %v1468_v0, %v1702_v54  ;;  %1489 = vpow2.f32 %v1271_v36 }
 0x121   : > { %v1472_v11 = vpop.eup %1471  ;;  %1083 = vst [vmem:[%s1790_s18 + $0x18] sm:$0xff] %v1051_v47  ;;  %v1049_v53 = vmul.f32 %v1470_v3, %v1707_v57  ;;  %1491 = vpow2.f32 %v1287_v40  ;;  %v1286_v57 = vmul.f32 -1.442695, %v1821_v1  ;;  %v1862_v47 = vadd.f32 %v1674_v30, %v800_v50 }
 0x122   : > { %v1474_v20 = vpop.eup %1473  ;;  %1099 = vst [vmem:[%s1790_s18 + $0x98] sm:$0xff] %v1067_v48  ;;  %v1065_v54 = vmul.f32 %v1472_v11, %v1710_v58  ;;  %1493 = vpow2.f32 %v1269_v62  ;;  %v1275_v58 = vmul.f32 -1.442695, %v1827_v8  ;;  %v819_v62 = vmul.f32 %v1772_v17, %v1672_v29 }
 0x123   : > { %v1476_v22 = vpop.eup %1475  ;;  %1081 = vst [vmem:[%s1790_s18 + $0x8] sm:$0xff] %v1049_v53  ;;  %v1054_v25 = vmul.f32 %v1474_v20, %v1721_v9  ;;  %1495 = vpow2.f32 %v1285_v2  ;;  %v1291_v9 = vmul.f32 -1.442695, %v1833_v19  ;;  %v817_v48 = vmul.f32 %v1672_v29, %v1779_v24 }
 0x124   : > { %v1478_v26 = vpop.eup %1477  ;;  %1097 = vst [vmem:[%s1790_s18 + $0x88] sm:$0xff] %v1065_v54  ;;  %v1070_v31 = vmul.f32 %v1476_v22, %v1724_v10  ;;  %1497 = vpow2.f32 %v1272_v4  ;;  %v1872_v11 = vadd.f32 %v1674_v30, %v803_v43  ;;  %v1875_v23 = vadd.f32 %v1674_v30, %v819_v62 }
 0x125   : > { %v1480_v32 = vpop.eup %1479  ;;  %1086 = vst [vmem:[%s1790_s18 + $0x30] sm:$0xff] %v1054_v25  ;;  %v1052_v35 = vmul.f32 %v1478_v26, %v1728_v14  ;;  %1499 = vpow2.f32 %v1288_v12  ;;  %v1879_v29 = vadd.f32 %v1674_v30, %v801_v7  ;;  %v1289_v25 = vmul.f32 -1.442695, %v1867_v16 }
 0x126   : > { %v1482_v36 = vpop.eup %1481  ;;  %1102 = vst [vmem:[%s1790_s18 + $0xb0] sm:$0xff] %v1070_v31  ;;  %v1068_v37 = vmul.f32 %v1480_v32, %v1731_v15  ;;  %1501 = vpow2.f32 %v1270_v21  ;;  %v1273_v21 = vmul.f32 -1.442695, %v1862_v47 }
 0x127   : > { %v1484_v27 = vpop.eup %1483  ;;  %1084 = vst [vmem:[%s1790_s18 + $0x20] sm:$0xff] %v1052_v35  ;;  %v1055_v10 = vmul.f32 %v1482_v36, %v1736_v18  ;;  %1503 = vpow2.f32 %v1286_v57  ;;  %v1883_v57 = vadd.f32 %v1674_v30, %v817_v48  ;;  %v1274_v30 = vmul.f32 -1.442695, %v1879_v29 }
 0x128   : > { %v1486_v39 = vpop.eup %1485  ;;  %1100 = vst [vmem:[%s1790_s18 + $0xa0] sm:$0xff] %v1068_v37  ;;  %v975_v40 = vadd.f32 1.0, %v1484_v27  ;;  %1505 = vpow2.f32 %v1275_v58  ;;  %v1276_v58 = vmul.f32 -1.442695, %v1872_v11 }
 0x129   : > { %v1488_v33 = vpop.eup %1487  ;;  %1087 = vst [vmem:[%s1790_s18 + $0x38] sm:$0xff] %v1055_v10  ;;  %v957_v14 = vadd.f32 1.0, %v1486_v39  ;;  %1507 = vpow2.f32 %v1291_v9  ;;  %v1292_v9 = vmul.f32 -1.442695, %v1875_v23 }
 0x12a   : > { %v1490_v44 = vpop.eup %1489  ;;  %1509 = vrcp.f32 %v975_v40  ;;  %v973_v45 = vadd.f32 1.0, %v1488_v33 }
 0x12b   : > { %v1492_v49 = vpop.eup %1491  ;;  %1511 = vrcp.f32 %v957_v14  ;;  %v962_v15 = vadd.f32 1.0, %v1490_v44 }
 0x12c   : > { %v1494_v51 = vpop.eup %1493  ;;  %1513 = vrcp.f32 %v973_v45  ;;  %v978_v18 = vadd.f32 1.0, %v1492_v49 }
 0x12d   : > { %v1496_v56 = vpop.eup %1495  ;;  %1515 = vrcp.f32 %v962_v15  ;;  %v960_v41 = vadd.f32 1.0, %v1494_v51 }
 0x12e   : > { %v1498_v61 = vpop.eup %1497  ;;  %1517 = vrcp.f32 %v978_v18  ;;  %v976_v42 = vadd.f32 1.0, %v1496_v56 }
 0x12f   : > { %v1500_v0 = vpop.eup %1499  ;;  %1519 = vrcp.f32 %v960_v41  ;;  %v963_v6 = vadd.f32 1.0, %v1498_v61 }
 0x130   : > { %v1502_v2 = vpop.eup %1501  ;;  %1521 = vrcp.f32 %v976_v42  ;;  %v979_v3 = vadd.f32 1.0, %v1500_v0 }
 0x131   : > { %v1504_v4 = vpop.eup %1503  ;;  %1523 = vrcp.f32 %v963_v6  ;;  %v961_v17 = vadd.f32 1.0, %v1502_v2 }
 0x132   : > { %v1506_v53 = vpop.eup %1505  ;;  %1525 = vrcp.f32 %v979_v3  ;;  %v977_v12 = vadd.f32 1.0, %v1504_v4 }
 0x133   : > { %v1508_v20 = vpop.eup %1507  ;;  %1527 = vrcp.f32 %v961_v17  ;;  %v966_v54 = vadd.f32 1.0, %v1506_v53 }
 0x134   : > { %v1510_v24 = vpop.eup %1509  ;;  %1529 = vrcp.f32 %v977_v12  ;;  %v982_v22 = vadd.f32 1.0, %v1508_v20 }
 0x135   : > { %v1512_v26 = vpop.eup %1511  ;;  %v1071_v31 = vmul.f32 %v1510_v24, %v1747_v46  ;;  %1531 = vrcp.f32 %v966_v54 }
 0x136   : > { %v1514_v32 = vpop.eup %1513  ;;  %v1053_v35 = vmul.f32 %v1512_v26, %v1751_v52  ;;  %1533 = vrcp.f32 %v982_v22  ;;  %v1290_v52 = vmul.f32 -1.442695, %v1883_v57 }
 0x137   : > { %v1516_v36 = vpop.eup %1515  ;;  %1103 = vst [vmem:[%s1790_s18 + $0xb8] sm:$0xff] %v1071_v31  ;;  %v1069_v37 = vmul.f32 %v1514_v32, %v1755_v60  ;;  %1535 = vpow2.f32 %v1273_v21 }
 0x138   : > { %v1518_v46 = vpop.eup %1517  ;;  %1085 = vst [vmem:[%s1790_s18 + $0x28] sm:$0xff] %v1053_v35  ;;  %v1058_v27 = vmul.f32 %v1516_v36, %v1760_v5  ;;  %1537 = vpow2.f32 %v1289_v25 }
 0x139   : > { %v1520_v10 = vpop.eup %1519  ;;  %1101 = vst [vmem:[%s1790_s18 + $0xa8] sm:$0xff] %v1069_v37  ;;  %v1074_v39 = vmul.f32 %v1518_v46, %v1768_v13  ;;  %1539 = vpow2.f32 %v1276_v58 }
 0x13a   : > { %v1522_v40 = vpop.eup %1521  ;;  %1090 = vst [vmem:[%s1790_s18 + $0x50] sm:$0xff] %v1058_v27  ;;  %v1056_v60 = vmul.f32 %v1520_v10, %v1782_v28  ;;  %1541 = vpow2.f32 %v1292_v9 }
 0x13b   : > { %v1524_v33 = vpop.eup %1523  ;;  %1106 = vst [vmem:[%s1790_s18 + $0xd0] sm:$0xff] %v1074_v39  ;;  %v1072_v5 = vmul.f32 %v1522_v40, %v1796_v34  ;;  %1543 = vpow2.f32 %v1274_v30 }
 0x13c   : > { %v1526_v14 = vpop.eup %1525  ;;  %1088 = vst [vmem:[%s1790_s18 + $0x40] sm:$0xff] %v1056_v60  ;;  %v1059_v44 = vmul.f32 %v1524_v33, %v1802_v55  ;;  %1545 = vpow2.f32 %v1290_v52 }
 0x13d   : > { %v1528_v13 = vpop.eup %1527  ;;  %1104 = vst [vmem:[%s1790_s18 + $0xc0] sm:$0xff] %v1072_v5  ;;  %v1075_v45 = vmul.f32 %v1526_v14, %v1808_v59 }
 0x13e   : > { %v1530_v28 = vpop.eup %1529  ;;  %1091 = vst [vmem:[%s1790_s18 + $0x58] sm:$0xff] %v1059_v44  ;;  %v1057_v49 = vmul.f32 %v1528_v13, %v1815_v63 }
 0x13f   : > { %v1532_v15 = vpop.eup %1531  ;;  %1107 = vst [vmem:[%s1790_s18 + $0xd8] sm:$0xff] %v1075_v45  ;;  %v1073_v34 = vmul.f32 %v1530_v28, %v1821_v1 }
 0x140   : > { %v1534_v50 = vpop.eup %1533  ;;  %1089 = vst [vmem:[%s1790_s18 + $0x48] sm:$0xff] %v1057_v49  ;;  %v1062_v51 = vmul.f32 %v1532_v15, %v1827_v8 }
 0x141   : > { %v1536_v55 = vpop.eup %1535  ;;  %1105 = vst [vmem:[%s1790_s18 + $0xc8] sm:$0xff] %v1073_v34  ;;  %v1078_v18 = vmul.f32 %v1534_v50, %v1833_v19 }
 0x142   : > { %v1538_v38 = vpop.eup %1537  ;;  %1094 = vst [vmem:[%s1790_s18 + $0x70] sm:$0xff] %v1062_v51  ;;  %v964_v59 = vadd.f32 1.0, %v1536_v55 }
 0x143   : > { %v1540_v56 = vpop.eup %1539  ;;  %1110 = vst [vmem:[%s1790_s18 + $0xf0] sm:$0xff] %v1078_v18  ;;  %v980_v41 = vadd.f32 1.0, %v1538_v38 }
 0x144   : > { %v1542_v43 = vpop.eup %1541  ;;  %1547 = vrcp.f32 %v964_v59  ;;  %v967_v63 = vadd.f32 1.0, %v1540_v56 }
 0x145   : > { %v1544_v61 = vpop.eup %1543  ;;  %1549 = vrcp.f32 %v980_v41  ;;  %v983_v1 = vadd.f32 1.0, %v1542_v43 }
 0x146   : > { %v1546_v42 = vpop.eup %1545  ;;  %1551 = vrcp.f32 %v967_v63  ;;  %v965_v8 = vadd.f32 1.0, %v1544_v61 }
 0x147   : > { %1553 = vrcp.f32 %v983_v1  ;;  %v981_v19 = vadd.f32 1.0, %v1546_v42 }
 0x148   : > { %1555 = vrcp.f32 %v965_v8 }
 0x149   : > { %1557 = vrcp.f32 %v981_v19 }
 0x14e   : > { %v1548_v62 = vpop.eup %1547 }
 0x14f   : > { %v1550_v0 = vpop.eup %1549  ;;  %v1060_v6 = vmul.f32 %v1548_v62, %v1862_v47 }
 0x150   : > { %v1552_v7 = vpop.eup %1551  ;;  %v1076_v2 = vmul.f32 %v1550_v0, %v1867_v16 }
 0x151   : > { %v1554_v3 = vpop.eup %1553  ;;  %1092 = vst [vmem:[%s1790_s18 + $0x60] sm:$0xff] %v1060_v6  ;;  %v1063_v48 = vmul.f32 %v1552_v7, %v1872_v11 }
 0x152   : > { %v1556_v4 = vpop.eup %1555  ;;  %1108 = vst [vmem:[%s1790_s18 + $0xe0] sm:$0xff] %v1076_v2  ;;  %v1079_v17 = vmul.f32 %v1554_v3, %v1875_v23 }
 0x153   : > { %v1558_v53 = vpop.eup %1557  ;;  %1095 = vst [vmem:[%s1790_s18 + $0x78] sm:$0xff] %v1063_v48  ;;  %v1061_v12 = vmul.f32 %v1556_v4, %v1879_v29 }
 0x154   : > { %1111 = vst [vmem:[%s1790_s18 + $0xf8] sm:$0xff] %v1079_v17  ;;  %v1077_v20 = vmul.f32 %v1558_v53, %v1883_v57 }
 0x155   : > { %1093 = vst [vmem:[%s1790_s18 + $0x68] sm:$0xff] %v1061_v12 }
 0x156   : > { %1109 = vst [vmem:[%s1790_s18 + $0xe8] sm:$0xff] %v1077_v20 }
 0x157 PF: > { %s13_s14 = sadd.s32 1, %s1581_s14   ;;  %s1940_s12 = smov %s1577_s13 }
 0x158   : > { %p10_p5 = scmp.ge.s32.totalorder %s13_s14, 4   ;;  %s1941_s13 = smov %s1943_s15 }
 0x15a   :  { %12 = sbr.rel (!%p10_p5) target bundleno = 2 (0x2), region = 76 }

</bundles_post_ra>
